<compile_context>
chip_gen: v7x
topology: tpu7x:2x2x1
jax: 0.10.0
libtpu: 0.0.40
codegen_flags: <defaults>
</compile_context>

<pallas_src>
import functools

import jax
import jax.numpy as jnp
from jax.experimental import pallas as pl
from jax.experimental.pallas import tpu as pltpu

BN_EPS = 1e-5


def _cdiv(a, b):
    return (a + b - 1) // b


def _round_up(x, m):
    return _cdiv(x, m) * m


# ---------------------------------------------------------------------------
# Kernel 1a: full-spatial mean pool.  One spatial step per row block; the
# whole HW extent of a row block is in VMEM, so the reduce happens once.
# Grid: (row-blocks,) marked "parallel".
# ---------------------------------------------------------------------------
def _pool_mean_single(inv_hw, x_ref, o_ref):
    o_ref[...] = jnp.sum(x_ref[...], axis=-1, keepdims=True) * inv_hw


# ---------------------------------------------------------------------------
# Kernel 1b: streamed spatial mean pool for very large HW.
# Grid: (row-blocks [parallel], spatial-blocks [arbitrary]).
# Lane-dense (tR, 128) scratch accumulator; ragged last spatial tile is masked
# in-kernel; cross-lane reduce + (tR, 1) store only on the last spatial step.
# ---------------------------------------------------------------------------
def _pool_mean_streamed(hw, inv_hw, needs_mask, x_ref, o_ref, acc_ref):
    k = pl.program_id(1)

    @pl.when(k == 0)
    def _():
        acc_ref[...] = jnp.zeros_like(acc_ref)

    x = x_ref[...]                                  # (tR, tHW), tHW % 128 == 0
    t_hw = x.shape[-1]
    if needs_mask:
        # Out-of-bounds columns of the last tile are NOT zero-filled by Pallas.
        col = k * t_hw + jax.lax.broadcasted_iota(jnp.int32, x.shape, 1)
        x = jnp.where(col < hw, x, 0.0)

    # VPU-only partial reduction of 128-lane groups (no per-step XLU reduce,
    # no per-step masked width-1 store).
    part = x[:, 0:128]
    for j in range(1, t_hw // 128):
        part = part + x[:, j * 128:(j + 1) * 128]
    acc_ref[...] += part

    @pl.when(k == pl.num_programs(1) - 1)
    def _():
        o_ref[...] = jnp.sum(acc_ref[...], axis=-1, keepdims=True) * inv_hw


# ---------------------------------------------------------------------------
# Kernel 2: tiny finalize — 1x1-conv MLP (two small matmuls + ReLU) and
# training-mode BatchNorm2d over the batch axis (biased variance).
# p_ref rows: 0 = conv2 bias, 1 = BN gamma, 2 = BN beta.
# ---------------------------------------------------------------------------
def _mlp_bn_kernel(pooled_ref, w1_ref, b1_ref, w2_ref, p_ref, o_ref):
    pooled = pooled_ref[...]                                          # (B, C)

    h = jnp.dot(pooled, w1_ref[...],
                preferred_element_type=jnp.float32) + b1_ref[...]     # (B, hid)
    h = jnp.maximum(h, 0.0)

    y = jnp.dot(h, w2_ref[...],
                preferred_element_type=jnp.float32) + p_ref[0:1, :]   # (B, C)

    mu = jnp.mean(y, axis=0, keepdims=True)                           # (1, C)
    var = jnp.mean((y - mu) ** 2, axis=0, keepdims=True)              # (1, C)
    y_hat = (y - mu) * jax.lax.rsqrt(var + BN_EPS)
    o_ref[...] = y_hat * p_ref[1:2, :] + p_ref[2:3, :]


def channel_gate(x, w1, b1, w2, b2, gamma, beta, *, target_block_bytes=4 << 20):
    """x: (B, C, H, W) NCHW float32.  Returns (B, C, 1, 1)."""
    B, C, H, W = x.shape
    hid = w1.shape[0]
    R, HW = B * C, H * W
    x_flat = x.reshape(R, HW)          # contiguous view; no extra HBM copy

    # ---- kernel-1 tile selection (no padding of x) -------------------------
    R8 = _round_up(R, 8)
    target_elems = max(target_block_bytes // 4, 8 * 128)
    if HW * 8 <= target_elems:
        # Full spatial extent per block (== full array dim, so no 128 rule).
        t_hw = HW
        t_r = min(R8, max(8, (target_elems // HW) // 8 * 8))
    else:
        # Very large spatial maps: stream HW in wide lane-aligned tiles.
        t_r = 8
        t_hw = min(_round_up(HW, 128),
                   max(2048, (target_elems // 8) // 128 * 128))
    if R8 > 8:
        # Keep >= 2 row blocks so the "parallel" axis feeds both v7x TCs.
        t_r = min(t_r, _round_up(_cdiv(R8, 2), 8))
    n_r = _cdiv(R, t_r)
    n_hw = _cdiv(HW, t_hw)

    block_bytes = t_r * t_hw * 4
    # Double-buffered input + scratch/output + headroom; safe on 64 MiB (v7x)
    # and 128 MiB (v5e/v6e) VMEM.
    vmem_limit = int(min(64 << 20, max(16 << 20, 2 * block_bytes + (8 << 20))))

    inv_hw = 1.0 / float(HW)
    if n_hw == 1:
        pooled = pl.pallas_call(
            functools.partial(_pool_mean_single, inv_hw),
            out_shape=jax.ShapeDtypeStruct((R, 1), jnp.float32),
            grid=(n_r,),
            in_specs=[pl.BlockSpec((t_r, t_hw), lambda r: (r, 0))],
            out_specs=pl.BlockSpec((t_r, 1), lambda r: (r, 0)),
            compiler_params=pltpu.CompilerParams(
                dimension_semantics=("parallel",),
                vmem_limit_bytes=vmem_limit),
        )(x_flat)
    else:
        needs_mask = (HW % t_hw) != 0
        pooled = pl.pallas_call(
            functools.partial(_pool_mean_streamed, HW, inv_hw, needs_mask),
            out_shape=jax.ShapeDtypeStruct((R, 1), jnp.float32),
            grid=(n_r, n_hw),
            in_specs=[pl.BlockSpec((t_r, t_hw), lambda r, k: (r, k))],
            out_specs=pl.BlockSpec((t_r, 1), lambda r, k: (r, 0)),
            scratch_shapes=[pltpu.VMEM((t_r, 128), jnp.float32)],
            compiler_params=pltpu.CompilerParams(
                dimension_semantics=("parallel", "arbitrary"),
                vmem_limit_bytes=vmem_limit),
        )(x_flat)

    pooled = pooled.reshape(B, C)      # tiny; free-ish XLA reshape

    # Pre-transpose conv weights so in-kernel matmuls are lane-dense, and pack
    # the tiny per-channel params into one (3, C) array (fewer tiny DMAs).
    w1t = w1.reshape(hid, C).T                      # (C, hid)
    w2t = w2.reshape(C, hid).T                      # (hid, C)
    b1r = b1.reshape(1, hid)
    params = jnp.stack([b2, gamma, beta], axis=0)   # (3, C)

    full = lambda shape: pl.BlockSpec(shape, lambda i: (0,) * len(shape))
    out = pl.pallas_call(
        _mlp_bn_kernel,
        out_shape=jax.ShapeDtypeStruct((B, C), jnp.float32),
        grid=(1,),
        in_specs=[full((B, C)), full((C, hid)), full((1, hid)),
                  full((hid, C)), full((3, C))],
        out_specs=full((B, C)),
        compiler_params=pltpu.CompilerParams(
            dimension_semantics=("arbitrary",)),
    )(pooled, w1t, b1r, w2t, params)

    return out.reshape(B, C, 1, 1)


def channel_gate_ref(x, w1, b1, w2, b2, gamma, beta):
    """Pure-JAX reference (same semantics as the PyTorch module, training-mode BN)."""
    B, C, H, W = x.shape
    hid = w1.shape[0]
    pooled = jnp.mean(x, axis=(2, 3))                              # (B, C)
    h = jnp.maximum(pooled @ w1.reshape(hid, C).T + b1, 0.0)       # (B, hid)
    y = h @ w2.reshape(C, hid).T + b2                              # (B, C)
    mu = jnp.mean(y, axis=0, keepdims=True)
    var = jnp.mean((y - mu) ** 2, axis=0, keepdims=True)
    out = (y - mu) / jnp.sqrt(var + BN_EPS) * gamma + beta
    return out.reshape(B, C, 1, 1)


def _run_case(B, C, H, W, ratio, target_block_bytes):
    hid = C // ratio
    key = jax.random.PRNGKey(0)
    kx, k1, k2, k3, k4, k5, k6 = jax.random.split(key, 7)

    x = jax.random.normal(kx, (B, C, H, W), dtype=jnp.float32)
    w1 = jax.random.normal(k1, (hid, C, 1, 1), dtype=jnp.float32) * (1.0 / jnp.sqrt(C))
    b1 = jax.random.normal(k2, (hid,), dtype=jnp.float32) * 0.1
    w2 = jax.random.normal(k3, (C, hid, 1, 1), dtype=jnp.float32) * (1.0 / jnp.sqrt(hid))
    b2 = jax.random.normal(k4, (C,), dtype=jnp.float32) * 0.1
    gamma = 1.0 + 0.1 * jax.random.normal(k5, (C,), dtype=jnp.float32)
    beta = 0.1 * jax.random.normal(k6, (C,), dtype=jnp.float32)

    kwargs = {}
    if target_block_bytes is not None:
        kwargs["target_block_bytes"] = target_block_bytes
    out = channel_gate(x, w1, b1, w2, b2, gamma, beta, **kwargs)
    out = jax.block_until_ready(out)

    ref = channel_gate_ref(x, w1, b1, w2, b2, gamma, beta)
    assert out.shape == (B, C, 1, 1)
    assert jnp.allclose(out, ref, atol=5e-4, rtol=5e-4), \
        f"mismatch for shape {(B, C, H, W)}: max abs err " \
        f"{float(jnp.max(jnp.abs(out - ref)))}"


if __name__ == "__main__":
    # 1) ChannelGate(channels=64, ratio=16), H=W=24: full-HW blocks,
    #    two "parallel" row blocks (R=256, tR=128), no padding anywhere.
    _run_case(4, 64, 24, 24, ratio=16, target_block_bytes=None)
    # 2) Forced streamed-spatial path (tiny block target): HW=2304 split into
    #    2048-wide tiles with a ragged, in-kernel-masked last tile.
    _run_case(2, 8, 48, 48, ratio=4, target_block_bytes=8192)
    # 3) Ragged row block (R=60 not a multiple of tR): exercises the masked
    #    out-of-bounds output writeback.
    _run_case(3, 20, 16, 16, ratio=4, target_block_bytes=None)

    print("KERNEL_OK")
</pallas_src>

<mosaic_0001>
module attributes {stable_mosaic.version = 11 : i64} {
  func.func @_pool_mean_single(%arg0: i32, %arg1: memref<128x576xf32, #tpu.memory_space<vmem>>, %arg2: memref<128x1xf32, #tpu.memory_space<vmem>>) attributes {dimension_semantics = [#tpu.dimension_semantics<parallel>], iteration_bounds = array<i64: 2>, scalar_prefetch = 0 : i64, scratch_operands = 0 : i64, tpu.core_type = #tpu.core_type<tc>, window_params = [{transform_indices = @transform_0, window_bounds = array<i64: 128, 576>}, {transform_indices = @transform_1, window_bounds = array<i64: 128, 1>}]} {
    %c0 = arith.constant 0 : index
    %c0_0 = arith.constant 0 : index
    %0 = vector.load %arg1[%c0, %c0_0] : memref<128x576xf32, #tpu.memory_space<vmem>>, vector<128x576xf32>
    %cst = arith.constant dense<0.000000e+00> : vector<128xf32>
    %1 = vector.multi_reduction <add>, %0, %cst [1] : vector<128x576xf32> to vector<128xf32>
    %2 = vector.shape_cast %1 : vector<128xf32> to vector<128x1xf32>
    %cst_1 = arith.constant 0.00173611112 : f32
    %3 = vector.broadcast %cst_1 : f32 to vector<128x1xf32>
    %4 = arith.mulf %2, %3 : vector<128x1xf32>
    %c0_2 = arith.constant 0 : index
    %c0_3 = arith.constant 0 : index
    %5 = vector.load %arg2[%c0_2, %c0_3] : memref<128x1xf32, #tpu.memory_space<vmem>>, vector<128x1xf32>
    tpu.vector_store %arg2[%c0_2, %c0_3], %4 {strides = array<i32>} : memref<128x1xf32, #tpu.memory_space<vmem>>, vector<128x1xf32>,
    return
  }
  func.func @transform_0(%arg0: i32) -> (i32, i32) {
    %c0_i32 = arith.constant 0 : i32
    %c0_i32_0 = arith.constant 0 : i32
    return %arg0, %c0_i32 : i32, i32
  }
  func.func @transform_1(%arg0: i32) -> (i32, i32) {
    %c0_i32 = arith.constant 0 : i32
    %c0_i32_0 = arith.constant 0 : i32
    return %arg0, %c0_i32 : i32, i32
  }
}

</mosaic_0001>

<bundles_post_ra>
// kernel: tpu_custom_call.1
= control target key start
LH: loop header
LB: loop body
LE: loop exit
PB: predicated region body
PF: predicated region fallthrough
CT: control target
= control target key end

     0   :  { %s443_s6 = smov 0   ;;  %s596_s0 = inlined_call_operand.vmem [shape: f32[256,576], index: 0, kind: input, shape index: {}]   ;;  %s597_s1 = inlined_call_operand.vmem [shape: f32[256,1], index: 1, kind: output, shape index: {}]  }
   0x1 LB: > { %s405_s7 = sadd.s32 4294967295, %s431_s6   ;;  %p409_p0 = scmp.ge.s32.totalorder %s431_s6, 1  ;;  %s431_s6 = sphi %s443_s6, %s11_s6  }
   0x2   : > { %p89_p1 = scmp.lt.s32.totalorder %s431_s6, 3 }
   0x4   : > { %p90_p2 = pnand %p409_p0, %p89_p1 }
   0x5   : > { %s410_s8 = sshll.u32 (!%p90_p2), %s405_s7, 4  ;;  %vm206_vm0 = vcmask (!%p90_p2), 523264   ;;  %vm332_vm1 = vcmask (!%p90_p2), 7168  }
   0x6   : > { %93 = sbr.rel (%p90_p2) target bundleno = 201 (0xc9), region = 24  ;;  %p111_p3 = scmp.lt.s32.totalorder (!%p90_p2), %s410_s8, 31 }
   0xd   : > { %s599_s8 = smov (!%p111_p3, %s410_s8), 31 }
   0xe   : > { %s416_s9 = smul.u32 40, %s599_s8  ;;  %s413_s13 = sshll.u32 %s599_s8, 3 }
   0xf   : > { %s559_s16 = scalar_lea.vmem %s597_s1, %s413_s13 }
  0x10   : > { %s457_s12 = scalar_lea.vmem %s596_s0, %s416_s9 }
  0x11   : > { %v133_v0 = vld [vmem:[%s457_s12 + $0x50] sm:$0xff]  ;;  %v134_v1 = vld [vmem:[%s457_s12 + $0x58] sm:$0xff]  ;;  %v135_v2 = vld [vmem:[%s457_s12 + $0x60] sm:$0xff] }
  0x12   : > { %v136_v3 = vld [vmem:[%s457_s12 + $0x68] sm:$0xff]  ;;  %v137_v4 = vld [vmem:[%s457_s12 + $0x70] sm:$0xff]  ;;  %v218_v5 = vadd.f32 %v134_v1, %v133_v0  ;;  %v123_v6 = vld [vmem:[%s457_s12] sm:$0xff] }
  0x13   : > { %v124_v7 = vld [vmem:[%s457_s12 + $0x8] sm:$0xff]  ;;  %v125_v8 = vld [vmem:[%s457_s12 + $0x10] sm:$0xff]  ;;  %v126_v9 = vld [vmem:[%s457_s12 + $0x18] sm:$0xff]  ;;  %v221_v15 = vsel %vm206_vm0, %v137_v4, 0.0 }
  0x14   : > { %v219_v10 = vadd.f32 %v218_v5, %v135_v2  ;;  %v127_v11 = vld [vmem:[%s457_s12 + $0x20] sm:$0xff]  ;;  %v203_v12 = vadd.f32 %v124_v7, %v123_v6  ;;  %v138_v13 = vld [vmem:[%s457_s12 + $0x78] sm:$0xff]  ;;  %v140_v16 = vld [vmem:[%s457_s12 + $0x88] sm:$0xff] }
  0x15   : > { %v139_v14 = vld [vmem:[%s457_s12 + $0x80] sm:$0xff]  ;;  %v141_v17 = vld [vmem:[%s457_s12 + $0x90] sm:$0xff]  ;;  %v142_v18 = vld [vmem:[%s457_s12 + $0x98] sm:$0xff]  ;;  %v207_v25 = vsel %vm206_vm0, %v127_v11, 0.0 }
  0x16   : > { %v225_v19 = vadd.f32 %v139_v14, %v138_v13  ;;  %v220_v20 = vadd.f32 %v219_v10, %v136_v3  ;;  %v204_v21 = vadd.f32 %v203_v12, %v125_v8  ;;  %v128_v22 = vld [vmem:[%s457_s12 + $0x28] sm:$0xff]  ;;  %v129_v23 = vld [vmem:[%s457_s12 + $0x30] sm:$0xff]  ;;  %v130_v24 = vld [vmem:[%s457_s12 + $0x38] sm:$0xff]  ;;  %v228_v33 = vsel %vm206_vm0, %v142_v18, 0.0 }
  0x17   : > { %v131_v27 = vld [vmem:[%s457_s12 + $0x40] sm:$0xff]  ;;  %v132_v28 = vld [vmem:[%s457_s12 + $0x48] sm:$0xff]  ;;  %v211_v29 = vadd.f32 %v129_v23, %v128_v22  ;;  %v149_v34 = vld [vmem:[%s457_s12 + $0xd0] sm:$0xff] }
  0x18   : > { %v226_v26 = vadd.f32 %v225_v19, %v140_v16  ;;  %v148_v30 = vld [vmem:[%s457_s12 + $0xc8] sm:$0xff]  ;;  %v222_v31 = vadd.f32 %v221_v15, %v220_v20  ;;  %v205_v32 = vadd.f32 %v204_v21, %v126_v9  ;;  %v150_v35 = vld [vmem:[%s457_s12 + $0xd8] sm:$0xff]  ;;  %v151_v36 = vld [vmem:[%s457_s12 + $0xe0] sm:$0xff]  ;;  %v214_v44 = vsel %vm206_vm0, %v132_v28, 0.0 }
  0x19   : > { %v212_v38 = vadd.f32 %v211_v29, %v130_v24  ;;  %v152_v39 = vld [vmem:[%s457_s12 + $0xe8] sm:$0xff]  ;;  %v239_v40 = vadd.f32 %v149_v34, %v148_v30  ;;  %v143_v41 = vld [vmem:[%s457_s12 + $0xa0] sm:$0xff]  ;;  %v145_v45 = vld [vmem:[%s457_s12 + $0xb0] sm:$0xff] }
  0x1a   : > { %v227_v37 = vadd.f32 %v226_v26, %v141_v17  ;;  %v144_v42 = vld [vmem:[%s457_s12 + $0xa8] sm:$0xff]  ;;  %223 = vadd.xlane.f32.xlu1 %v222_v31  ;;  %v208_v43 = vadd.f32 %v207_v25, %v205_v32  ;;  %v146_v46 = vld [vmem:[%s457_s12 + $0xb8] sm:$0xff]  ;;  %v147_v47 = vld [vmem:[%s457_s12 + $0xc0] sm:$0xff]  ;;  %v242_v55 = vsel %vm206_vm0, %v152_v39, 0.0 }
  0x1b   : > { %v232_v48 = vadd.f32 %v144_v42, %v143_v41  ;;  %v213_v50 = vadd.f32 %v212_v38, %v131_v27  ;;  %v240_v51 = vadd.f32 %v239_v40, %v150_v35  ;;  %v158_v52 = vld [vmem:[%s457_s12 + $0x118] sm:$0xff]  ;;  %v159_v53 = vld [vmem:[%s457_s12 + $0x120] sm:$0xff]  ;;  %v160_v54 = vld [vmem:[%s457_s12 + $0x128] sm:$0xff]  ;;  %v235_v63 = vsel %vm206_vm0, %v147_v47, 0.0 }
  0x1c   : > { %v229_v49 = vadd.f32 %v228_v33, %v227_v37  ;;  %209 = vadd.xlane.f32.xlu0 %v208_v43  ;;  %v161_v57 = vld [vmem:[%s457_s12 + $0x130] sm:$0xff]  ;;  %v162_v58 = vld [vmem:[%s457_s12 + $0x138] sm:$0xff]  ;;  %v253_v59 = vadd.f32 %v159_v53, %v158_v52  ;;  %v155_v1 = vld [vmem:[%s457_s12 + $0x100] sm:$0xff] }
  0x1d   : > { %v233_v56 = vadd.f32 %v232_v48, %v145_v45  ;;  %v153_v60 = vld [vmem:[%s457_s12 + $0xf0] sm:$0xff]  ;;  %v215_v61 = vadd.f32 %v214_v44, %v213_v50  ;;  %v241_v62 = vadd.f32 %v240_v51, %v151_v36  ;;  %v154_v0 = vld [vmem:[%s457_s12 + $0xf8] sm:$0xff]  ;;  %v156_v2 = vld [vmem:[%s457_s12 + $0x108] sm:$0xff]  ;;  %v256_v10 = vsel %vm206_vm0, %v162_v58, 0.0 }
  0x1e   : > { %230 = vadd.xlane.f32.xlu1 %v229_v49  ;;  %v254_v4 = vadd.f32 %v253_v59, %v160_v54  ;;  %v157_v5 = vld [vmem:[%s457_s12 + $0x110] sm:$0xff]  ;;  %v246_v6 = vadd.f32 %v154_v0, %v153_v60  ;;  %v168_v7 = vld [vmem:[%s457_s12 + $0x168] sm:$0xff]  ;;  %v170_v11 = vld [vmem:[%s457_s12 + $0x178] sm:$0xff] }
  0x1f   : > { %v234_v3 = vadd.f32 %v233_v56, %v146_v46  ;;  %v169_v8 = vld [vmem:[%s457_s12 + $0x170] sm:$0xff]  ;;  %v243_v9 = vadd.f32 %v242_v55, %v241_v62  ;;  %v171_v12 = vld [vmem:[%s457_s12 + $0x180] sm:$0xff]  ;;  %v172_v13 = vld [vmem:[%s457_s12 + $0x188] sm:$0xff]  ;;  %v249_v21 = vsel %vm206_vm0, %v157_v5, 0.0 }
  0x20   : > { %v267_v14 = vadd.f32 %v169_v8, %v168_v7  ;;  %216 = vadd.xlane.f32.xlu0 %v215_v61  ;;  %v255_v16 = vadd.f32 %v254_v4, %v161_v57  ;;  %v247_v17 = vadd.f32 %v246_v6, %v155_v1  ;;  %v163_v18 = vld [vmem:[%s457_s12 + $0x140] sm:$0xff]  ;;  %v164_v19 = vld [vmem:[%s457_s12 + $0x148] sm:$0xff]  ;;  %v165_v20 = vld [vmem:[%s457_s12 + $0x150] sm:$0xff]  ;;  %v270_v32 = vsel %vm206_vm0, %v172_v13, 0.0 }
  0x21   : > { %v236_v15 = vadd.f32 %v235_v63, %v234_v3  ;;  %v166_v23 = vld [vmem:[%s457_s12 + $0x158] sm:$0xff]  ;;  %v260_v24 = vadd.f32 %v164_v19, %v163_v18  ;;  %v167_v28 = vld [vmem:[%s457_s12 + $0x160] sm:$0xff]  ;;  %v180_v30 = vld [vmem:[%s457_s12 + $0x1c8] sm:$0xff] }
  0x22   : > { %v268_v22 = vadd.f32 %v267_v14, %v170_v11  ;;  %v178_v25 = vld [vmem:[%s457_s12 + $0x1b8] sm:$0xff]  ;;  %244 = vadd.xlane.f32.xlu1 %v243_v9  ;;  %v257_v26 = vadd.f32 %v256_v10, %v255_v16  ;;  %v248_v27 = vadd.f32 %v247_v17, %v156_v2  ;;  %v179_v29 = vld [vmem:[%s457_s12 + $0x1c0] sm:$0xff]  ;;  %v181_v34 = vld [vmem:[%s457_s12 + $0x1d0] sm:$0xff]  ;;  %v263_v44 = vsel %vm206_vm0, %v167_v28, 0.0 }
  0x23   : > { %v261_v33 = vadd.f32 %v260_v24, %v165_v20  ;;  %v281_v35 = vadd.f32 %v179_v29, %v178_v25  ;;  %v173_v36 = vld [vmem:[%s457_s12 + $0x190] sm:$0xff]  ;;  %v174_v37 = vld [vmem:[%s457_s12 + $0x198] sm:$0xff]  ;;  %v175_v40 = vld [vmem:[%s457_s12 + $0x1a0] sm:$0xff] }
  0x24   : > { %v269_v31 = vadd.f32 %v268_v22, %v171_v12  ;;  %237 = vadd.xlane.f32.xlu0 %v236_v15  ;;  %v250_v38 = vadd.f32 %v249_v21, %v248_v27  ;;  %v182_v39 = vld [vmem:[%s457_s12 + $0x1d8] sm:$0xff]  ;;  %v176_v41 = vld [vmem:[%s457_s12 + $0x1a8] sm:$0xff]  ;;  %v274_v42 = vadd.f32 %v174_v37, %v173_v36  ;;  %v189_v47 = vld [vmem:[%s457_s12 + $0x210] sm:$0xff] }
  0x25   : > { %v262_v43 = vadd.f32 %v261_v33, %v166_v23  ;;  %v282_v45 = vadd.f32 %v281_v35, %v180_v30  ;;  %v188_v46 = vld [vmem:[%s457_s12 + $0x208] sm:$0xff]  ;;  %v190_v48 = vld [vmem:[%s457_s12 + $0x218] sm:$0xff]  ;;  %v177_v50 = vld [vmem:[%s457_s12 + $0x1b0] sm:$0xff]  ;;  %v284_v55 = vsel %vm206_vm0, %v182_v39, 0.0 }
  0x26   : > { %258 = vadd.xlane.f32.xlu1 %v257_v26  ;;  %v271_v49 = vadd.f32 %v270_v32, %v269_v31  ;;  %v275_v51 = vadd.f32 %v274_v42, %v175_v40  ;;  %v295_v52 = vadd.f32 %v189_v47, %v188_v46  ;;  %v183_v53 = vld [vmem:[%s457_s12 + $0x1e0] sm:$0xff]  ;;  %v184_v57 = vld [vmem:[%s457_s12 + $0x1e8] sm:$0xff]  ;;  %v185_v58 = vld [vmem:[%s457_s12 + $0x1f0] sm:$0xff]  ;;  %v277_v2 = vsel %vm206_vm0, %v177_v50, 0.0 }
  0x27   : > { %v283_v54 = vadd.f32 %v282_v45, %v181_v34  ;;  %v191_v56 = vld [vmem:[%s457_s12 + $0x220] sm:$0xff]  ;;  %v264_v59 = vadd.f32 %v263_v44, %v262_v43  ;;  %v192_v61 = vld [vmem:[%s457_s12 + $0x228] sm:$0xff]  ;;  %v288_v63 = vadd.f32 %v184_v57, %v183_v53  ;;  %v198_v0 = vld [vmem:[%s457_s12 + $0x258] sm:$0xff] }
  0x28   : > { %251 = vadd.xlane.f32.xlu0 %v250_v38  ;;  %v276_v60 = vadd.f32 %v275_v51, %v176_v41  ;;  %v296_v62 = vadd.f32 %v295_v52, %v190_v48  ;;  %v199_v1 = vld [vmem:[%s457_s12 + $0x260] sm:$0xff]  ;;  %v186_v3 = vld [vmem:[%s457_s12 + $0x1f8] sm:$0xff]  ;;  %v200_v5 = vld [vmem:[%s457_s12 + $0x268] sm:$0xff]  ;;  %v298_v13 = vsel %vm206_vm0, %v192_v61, 0.0 }
  0x29   : > { %v187_v4 = vld [vmem:[%s457_s12 + $0x200] sm:$0xff]  ;;  %v309_v6 = vadd.f32 %v199_v1, %v198_v0  ;;  %v285_v7 = vadd.f32 %v284_v55, %v283_v54  ;;  %v289_v9 = vadd.f32 %v288_v63, %v185_v58  ;;  %v193_v10 = vld [vmem:[%s457_s12 + $0x230] sm:$0xff]  ;;  %v194_v11 = vld [vmem:[%s457_s12 + $0x238] sm:$0xff] }
  0x2a   : > { %272 = vadd.xlane.f32.xlu1 %v271_v49  ;;  %v297_v8 = vadd.f32 %v296_v62, %v191_v56  ;;  %v195_v12 = vld [vmem:[%s457_s12 + $0x240] sm:$0xff]  ;;  %v201_v14 = vld [vmem:[%s457_s12 + $0x270] sm:$0xff]  ;;  %v302_v16 = vadd.f32 %v194_v11, %v193_v10  ;;  %v278_v17 = vadd.f32 %v277_v2, %v276_v60  ;;  %v202_v19 = vld [vmem:[%s457_s12 + $0x278] sm:$0xff]  ;;  %v291_v20 = vsel %vm206_vm0, %v187_v4, 0.0 }
  0x2b   : > { %v310_v15 = vadd.f32 %v309_v6, %v200_v5  ;;  %v290_v18 = vadd.f32 %v289_v9, %v186_v3  ;;  %v196_v21 = vld [vmem:[%s457_s12 + $0x248] sm:$0xff]  ;;  %v197_v25 = vld [vmem:[%s457_s12 + $0x250] sm:$0xff]  ;;  %v312_v26 = vsel %vm206_vm0, %v202_v19, 0.0 }
  0x2c   : > { %265 = vadd.xlane.f32.xlu0 %v264_v59  ;;  %v303_v22 = vadd.f32 %v302_v16, %v195_v12  ;;  %v299_v23 = vadd.f32 %v298_v13, %v297_v8  ;;  %v305_v29 = vsel %vm206_vm0, %v197_v25, 0.0 }
  0x2d   : > { %v311_v24 = vadd.f32 %v310_v15, %v201_v14  ;;  %v292_v27 = vadd.f32 %v291_v20, %v290_v18 }
  0x2e   : > { %286 = vadd.xlane.f32.xlu1 %v285_v7  ;;  %v304_v28 = vadd.f32 %v303_v22, %v196_v21 }
  0x2f   : > { %v313_v30 = vadd.f32 %v312_v26, %v311_v24 }
  0x30   : > { %279 = vadd.xlane.f32.xlu0 %v278_v17  ;;  %v306_v31 = vadd.f32 %v305_v29, %v304_v28 }
  0x32   : > { %300 = vadd.xlane.f32.xlu1 %v299_v23 }
  0x34   : > { %293 = vadd.xlane.f32.xlu0 %v292_v27 }
  0x36   : > { %314 = vadd.xlane.f32.xlu1 %v313_v30 }
  0x38   : > { %307 = vadd.xlane.f32.xlu0 %v306_v31 }
  0xa7   : > { %v224_v32 = vpop.xlane.xlu1 %223 }
  0xa8   : > { %v318_v33 = vmul.f32 0.0017361111, %v224_v32 }
  0xa9   : > { %v210_v34 = vpop.xlane.xlu0 %209 }
  0xaa   : > { %335 = vst.msk [vmem:[%s559_s16 + $0x10] sm:$0xff] %vm332_vm1, %v318_v33  ;;  %v316_v35 = vmul.f32 0.0017361111, %v210_v34 }
  0xab   : > { %v231_v36 = vpop.xlane.xlu1 %230 }
  0xac   : > { %333 = vst.msk [vmem:[%s559_s16] sm:$0xff] %vm332_vm1, %v316_v35  ;;  %v319_v37 = vmul.f32 0.0017361111, %v231_v36 }
  0xad   : > { %v217_v38 = vpop.xlane.xlu0 %216 }
  0xae   : > { %336 = vst.msk [vmem:[%s559_s16 + $0x18] sm:$0xff] %vm332_vm1, %v319_v37  ;;  %v317_v39 = vmul.f32 0.0017361111, %v217_v38 }
  0xaf   : > { %v245_v40 = vpop.xlane.xlu1 %244 }
  0xb0   : > { %334 = vst.msk [vmem:[%s559_s16 + $0x8] sm:$0xff] %vm332_vm1, %v317_v39  ;;  %v321_v41 = vmul.f32 0.0017361111, %v245_v40 }
  0xb1   : > { %v238_v42 = vpop.xlane.xlu0 %237 }
  0xb2   : > { %338 = vst.msk [vmem:[%s559_s16 + $0x28] sm:$0xff] %vm332_vm1, %v321_v41  ;;  %v320_v43 = vmul.f32 0.0017361111, %v238_v42 }
  0xb3   : > { %v259_v44 = vpop.xlane.xlu1 %258 }
  0xb4   : > { %337 = vst.msk [vmem:[%s559_s16 + $0x20] sm:$0xff] %vm332_vm1, %v320_v43  ;;  %v323_v45 = vmul.f32 0.0017361111, %v259_v44 }
  0xb5   : > { %v252_v46 = vpop.xlane.xlu0 %251 }
  0xb6   : > { %340 = vst.msk [vmem:[%s559_s16 + $0x38] sm:$0xff] %vm332_vm1, %v323_v45  ;;  %v322_v47 = vmul.f32 0.0017361111, %v252_v46 }
  0xb7   : > { %v273_v48 = vpop.xlane.xlu1 %272 }
  0xb8   : > { %339 = vst.msk [vmem:[%s559_s16 + $0x30] sm:$0xff] %vm332_vm1, %v322_v47  ;;  %v325_v49 = vmul.f32 0.0017361111, %v273_v48 }
  0xb9   : > { %v266_v50 = vpop.xlane.xlu0 %265 }
  0xba   : > { %342 = vst.msk [vmem:[%s559_s16 + $0x48] sm:$0xff] %vm332_vm1, %v325_v49  ;;  %v324_v51 = vmul.f32 0.0017361111, %v266_v50 }
  0xbb   : > { %v287_v52 = vpop.xlane.xlu1 %286 }
  0xbc   : > { %341 = vst.msk [vmem:[%s559_s16 + $0x40] sm:$0xff] %vm332_vm1, %v324_v51  ;;  %v327_v53 = vmul.f32 0.0017361111, %v287_v52 }
  0xbd   : > { %v280_v54 = vpop.xlane.xlu0 %279 }
  0xbe   : > { %344 = vst.msk [vmem:[%s559_s16 + $0x58] sm:$0xff] %vm332_vm1, %v327_v53  ;;  %v326_v55 = vmul.f32 0.0017361111, %v280_v54 }
  0xbf   : > { %v301_v56 = vpop.xlane.xlu1 %300 }
  0xc0   : > { %343 = vst.msk [vmem:[%s559_s16 + $0x50] sm:$0xff] %vm332_vm1, %v326_v55  ;;  %v329_v57 = vmul.f32 0.0017361111, %v301_v56 }
  0xc1   : > { %v294_v58 = vpop.xlane.xlu0 %293 }
  0xc2   : > { %346 = vst.msk [vmem:[%s559_s16 + $0x68] sm:$0xff] %vm332_vm1, %v329_v57  ;;  %v328_v59 = vmul.f32 0.0017361111, %v294_v58 }
  0xc3   : > { %v315_v60 = vpop.xlane.xlu1 %314 }
  0xc4   : > { %345 = vst.msk [vmem:[%s559_s16 + $0x60] sm:$0xff] %vm332_vm1, %v328_v59  ;;  %v331_v61 = vmul.f32 0.0017361111, %v315_v60 }
  0xc5   : > { %v308_v62 = vpop.xlane.xlu0 %307 }
  0xc6   : > { %348 = vst.msk [vmem:[%s559_s16 + $0x78] sm:$0xff] %vm332_vm1, %v331_v61  ;;  %v330_v63 = vmul.f32 0.0017361111, %v308_v62 }
  0xc8   : > { %347 = vst.msk [vmem:[%s559_s16 + $0x70] sm:$0xff] %vm332_vm1, %v330_v63 }
  0xc9 PF: > { %s11_s6 = sadd.s32 1, %s431_s6  }
  0xca   : > { %p8_p4 = scmp.ge.s32.totalorder %s11_s6, 4  }
  0xcc   :  { %10 = sbr.rel (!%p8_p4) target bundleno = 1 (0x1), region = 54 }

</bundles_post_ra>
